<compile_context>
chip_gen: v7x
topology: tpu7x:2x2x1
jax: 0.10.0
libtpu: 0.0.40
codegen_flags: <defaults>
</compile_context>

<pallas_src>
from functools import partial

import jax
import jax.numpy as jnp
from jax import lax
from jax.experimental import pallas as pl
from jax.experimental.pallas import tpu as pltpu


def _round_up(a: int, b: int) -> int:
    return (a + b - 1) // b * b


def _pick_tile(dim: int, want: int, unit: int) -> int:
    # Full-dim blocks are always layout-legal (no padding needed); otherwise align to `unit`.
    if dim <= want:
        return dim
    return max(unit, (want // unit) * unit)


def _bn_lrelu_matmul_kernel(ss_ref, x_ref, w_ref, o_ref, *scratch,
                            slope, compute_dtype, grid_k, tile_k, cache_y):
    # ss_ref : [2, C_in_p]  f32, once-resident (row 0 = scale, row 1 = shift)
    # x_ref  : [tile_n, tile_k]      (compute_dtype, pre-cast wrapper-side)
    # w_ref  : [tile_k, tile_cout]   (compute_dtype, pre-cast wrapper-side)
    # o_ref  : [tile_n, tile_cout]
    # scratch: [acc f32 (if grid_k>1)] [y-cache compute_dtype (if cache_y)]
    idx = 0
    acc_ref = None
    y_ref = None
    if grid_k > 1:
        acc_ref = scratch[idx]
        idx += 1
    if cache_y:
        y_ref = scratch[idx]
        idx += 1

    j = pl.program_id(1)
    k = pl.program_id(2)

    if grid_k == 1:
        ksl = slice(None)                                   # whole (and only) K chunk
    else:
        ksl = pl.ds(pl.multiple_of(k * tile_k, tile_k), tile_k)

    def compute_y():
        xv = x_ref[...].astype(jnp.float32)
        scale = ss_ref[pl.ds(0, 1), ksl]                    # [1, tile_k], broadcasts over rows
        shift = ss_ref[pl.ds(1, 1), ksl]                    # [1, tile_k]
        y = xv * scale + shift                              # folded BatchNorm (inference)
        y = jnp.maximum(y, slope * y)                       # LeakyReLU, valid for 0 < slope < 1
        return y.astype(compute_dtype)

    if cache_y:
        # Compute BN+LeakyReLU once per row-panel (j == 0); reuse for every other C_out tile.
        @pl.when(j == 0)
        def _():
            y_ref[:, ksl] = compute_y()
        y_op = y_ref[:, ksl]
    else:
        y_op = compute_y()

    part = jnp.dot(y_op, w_ref[...], preferred_element_type=jnp.float32)

    if grid_k == 1:
        # Single K step: write straight to the output, no accumulator round-trip.
        o_ref[...] = part.astype(o_ref.dtype)
    else:
        @pl.when(k == 0)
        def _():
            acc_ref[...] = part                             # no zero-init + RMW on step 0

        @pl.when(k > 0)
        def _():
            acc_ref[...] += part

        @pl.when(k == grid_k - 1)
        def _():
            o_ref[...] = acc_ref[...].astype(o_ref.dtype)


def fused_linear(x, gamma, beta, running_mean, running_var, w_t, *,
                 eps: float = 1e-5, slope: float = 0.1,
                 tile_n: int = 512, tile_cout: int = 512, tile_k: int = 1024,
                 compute_dtype=jnp.bfloat16, out_dtype=None):
    """Fused BN(inference) -> LeakyReLU -> Linear(no bias).

    x: [N, C_in]; gamma/beta/running_mean/running_var: [C_in]; w_t: [C_in, C_out].
    compute_dtype=bf16 (default) feeds the MXU at native rate with f32 accumulation;
    pass float32 for an exact path.  out_dtype defaults to x.dtype.
    """
    N, c_in = x.shape
    c_in_w, c_out = w_t.shape
    assert c_in_w == c_in, "w_t must be the transposed PyTorch weight [C_in, C_out]"
    out_dtype = x.dtype if out_dtype is None else out_dtype
    cd = jnp.dtype(compute_dtype).itemsize
    od = jnp.dtype(out_dtype).itemsize

    # ---- Fold BN into per-feature scale/shift, once, wrapper-side (stays f32) ----
    scale = gamma.astype(jnp.float32) * lax.rsqrt(running_var.astype(jnp.float32) + eps)
    shift = beta.astype(jnp.float32) - running_mean.astype(jnp.float32) * scale
    ss = jnp.stack([scale, shift], axis=0)                  # [2, C_in] f32

    # ---- Pre-cast MXU operands wrapper-side (halves DMA bytes + VMEM tiles for bf16) ----
    x_c = x.astype(compute_dtype)
    w_c = w_t.astype(compute_dtype)

    # ---- Tile selection ----
    tn = _pick_tile(N, tile_n, 8)
    tc = _pick_tile(c_out, tile_cout, 128)                  # lane-dense output stores
    tk = _pick_tile(c_in, tile_k, 128)

    def _main_ws(tn_, tc_, tk_):
        ws = 2 * tn_ * tk_ * cd + 2 * tk_ * tc_ * cd + 2 * tn_ * tc_ * od   # double-buffered
        if tk_ < c_in:
            ws += tn_ * tc_ * 4                              # f32 accumulator scratch
        return ws

    # Fit every generation (v7x has only 64 MiB VMEM per TensorCore).
    MAIN_BUDGET = 32 << 20
    while _main_ws(tn, tc, tk) > MAIN_BUDGET:
        if tk > 512:
            tk //= 2
        elif tc > 256:
            tc //= 2
        elif tn > 128:
            tn //= 2
        else:
            break

    grid_i = pl.cdiv(N, tn)
    grid_j = pl.cdiv(c_out, tc)

    # v7x megacore: make sure a "parallel" grid axis has >= 2 iterations when feasible.
    if grid_i * grid_j == 1:
        if N >= 16:
            tn = _round_up(pl.cdiv(N, 2), 8)
            grid_i = pl.cdiv(N, tn)
        elif c_out >= 256:
            tc = _round_up(pl.cdiv(c_out, 2), 128)
            grid_j = pl.cdiv(c_out, tc)

    grid_k = pl.cdiv(c_in, tk)
    c_in_p = grid_k * tk

    # Reuse BN+LeakyReLU (and the bf16 cast) across C_out tiles.  Only enabled when the
    # i axis can carry megacore parallelism (>=2 i tiles), since the j axis must then be
    # "arbitrary" for the cache to be valid under core splitting.
    cache_y = (grid_j > 1) and (grid_i >= 2) and (tn * c_in_p * cd <= (12 << 20))

    # Zero-pad K only when it is split and ragged (padding is exactly neutral:
    # scale = shift = 0 -> y = 0, and the padded weight rows are 0).
    if c_in_p > c_in:
        x_c = jnp.pad(x_c, ((0, 0), (0, c_in_p - c_in)))
        w_c = jnp.pad(w_c, ((0, c_in_p - c_in), (0, 0)))
        ss = jnp.pad(ss, ((0, 0), (0, c_in_p - c_in)))

    scratch_shapes = []
    if grid_k > 1:
        scratch_shapes.append(pltpu.VMEM((tn, tc), jnp.float32))
    if cache_y:
        scratch_shapes.append(pltpu.VMEM((tn, c_in_p), compute_dtype))

    if cache_y:
        # For j > 0 the x panel is not read; collapse its block index so it is not re-streamed.
        x_map = lambda i, j, k: (i, jnp.where(j == 0, k, 0))
    else:
        x_map = lambda i, j, k: (i, k)

    in_specs = [
        pl.BlockSpec((2, c_in_p), lambda i, j, k: (0, 0)),   # scale/shift: once-resident
        pl.BlockSpec((tn, tk), x_map),                       # x panel
        pl.BlockSpec((tk, tc), lambda i, j, k: (k, j)),      # W^T tile
    ]
    out_specs = pl.BlockSpec((tn, tc), lambda i, j, k: (i, j))

    dims = ("parallel", "arbitrary" if cache_y else "parallel", "arbitrary")

    ws_total = _main_ws(tn, tc, tk) + 2 * 2 * c_in_p * 4
    if cache_y:
        ws_total += tn * c_in_p * cd
    vmem_limit = int(min(max(ws_total + (8 << 20), 32 << 20), 48 << 20))

    cost = pl.CostEstimate(
        flops=2 * N * c_in * c_out,
        transcendentals=0,
        bytes_accessed=N * c_in * cd + c_in * c_out * cd + N * c_out * od)

    return pl.pallas_call(
        partial(_bn_lrelu_matmul_kernel, slope=slope, compute_dtype=compute_dtype,
                grid_k=grid_k, tile_k=tk, cache_y=cache_y),
        out_shape=jax.ShapeDtypeStruct((N, c_out), out_dtype),
        grid_spec=pltpu.PrefetchScalarGridSpec(
            num_scalar_prefetch=0,
            grid=(grid_i, grid_j, grid_k),
            in_specs=in_specs,
            out_specs=out_specs,
            scratch_shapes=scratch_shapes),
        compiler_params=pltpu.CompilerParams(
            dimension_semantics=dims,
            vmem_limit_bytes=vmem_limit),
        cost_estimate=cost,
    )(ss, x_c, w_c)


def reference(x, gamma, beta, running_mean, running_var, w_t, eps=1e-5, slope=0.1):
    xf = x.astype(jnp.float32)
    y = (xf - running_mean) * (gamma / jnp.sqrt(running_var + eps)) + beta
    y = jnp.where(y >= 0, y, slope * y)
    return jnp.dot(y, w_t)


# TODO(synk): BatchNorm training-mode batch statistics / running-stat updates are not implemented
# (inference-mode BN only, matching the PyTorch module's eval() forward).

if __name__ == "__main__":
    def make_inputs(key, n, c_in, c_out):
        kx, kg, kb, km, kv, kw = jax.random.split(key, 6)
        x = jax.random.normal(kx, (n, c_in), dtype=jnp.float32)
        gamma = jax.random.uniform(kg, (c_in,), minval=0.5, maxval=1.5, dtype=jnp.float32)
        beta = 0.1 * jax.random.normal(kb, (c_in,), dtype=jnp.float32)
        rmean = 0.1 * jax.random.normal(km, (c_in,), dtype=jnp.float32)
        rvar = jax.random.uniform(kv, (c_in,), minval=0.5, maxval=1.5, dtype=jnp.float32)
        # PyTorch nn.Linear weight is [C_out, C_in]; pass its transpose [C_in, C_out].
        w = (1.0 / jnp.sqrt(c_in)) * jax.random.normal(kw, (c_out, c_in), dtype=jnp.float32)
        return x, gamma, beta, rmean, rvar, w.T

    key = jax.random.PRNGKey(0)
    k1, k2, k3 = jax.random.split(key, 3)

    # --- Module-sized shapes: batch=8, in_channels=32, out_channels=64 (single-tile grid) ---
    args = make_inputs(k1, 8, 32, 64)
    ref = reference(*args)
    out_f32 = jax.block_until_ready(fused_linear(*args, compute_dtype=jnp.float32))
    assert out_f32.shape == (8, 64)
    assert jnp.allclose(out_f32, ref, atol=1e-4, rtol=1e-4), "tiny f32 mismatch vs reference"
    out_bf16 = jax.block_until_ready(fused_linear(*args, compute_dtype=jnp.bfloat16))
    assert jnp.allclose(out_bf16, ref, atol=1e-1, rtol=1e-1), "tiny bf16 mismatch vs reference"

    # --- Medium shape: exercises the megacore N-split + single-K direct-store path ---
    args = make_inputs(k2, 256, 512, 384)
    ref = reference(*args)
    out = jax.block_until_ready(fused_linear(*args, compute_dtype=jnp.float32))
    assert jnp.allclose(out, ref, atol=2e-3, rtol=2e-3), "medium f32 mismatch vs reference"

    # --- Larger shape: exercises K-split accumulation + y-cache reuse across C_out tiles ---
    args = make_inputs(k3, 1024, 2048, 1024)
    ref = reference(*args)
    out = jax.block_until_ready(fused_linear(*args, compute_dtype=jnp.float32))
    assert jnp.allclose(out, ref, atol=2e-3, rtol=2e-3), "large f32 mismatch vs reference"

    print("KERNEL_OK")
</pallas_src>

<mosaic_0001>
module attributes {stable_mosaic.version = 11 : i64} {
  func.func @_bn_lrelu_matmul_kernel(%arg0: i32, %arg1: i32, %arg2: i32, %arg3: memref<2x32xf32, #tpu.memory_space<vmem>>, %arg4: memref<8x32xf32, #tpu.memory_space<vmem>>, %arg5: memref<32x64xf32, #tpu.memory_space<vmem>>, %arg6: memref<8x64xf32, #tpu.memory_space<vmem>>) attributes {dimension_semantics = [#tpu.dimension_semantics<parallel>, #tpu.dimension_semantics<parallel>, #tpu.dimension_semantics<arbitrary>], iteration_bounds = array<i64: 1, 1, 1>, scalar_prefetch = 0 : i64, scratch_operands = 0 : i64, tpu.core_type = #tpu.core_type<tc>, window_params = [{pipeline_mode = #tpu.pipeline_mode<synchronous>, transform_indices = @transform_0, window_bounds = array<i64: 2, 32>}, {transform_indices = @transform_1, window_bounds = array<i64: 8, 32>}, {transform_indices = @transform_2, window_bounds = array<i64: 32, 64>}, {transform_indices = @transform_3, window_bounds = array<i64: 8, 64>}]} {
    %c0 = arith.constant 0 : index
    %c0_0 = arith.constant 0 : index
    %0 = vector.load %arg4[%c0, %c0_0] : memref<8x32xf32, #tpu.memory_space<vmem>>, vector<8x32xf32>
    %c0_1 = arith.constant 0 : index
    %c0_2 = arith.constant 0 : index
    %1 = vector.load %arg3[%c0_1, %c0_2] : memref<2x32xf32, #tpu.memory_space<vmem>>, vector<1x32xf32>
    %c1 = arith.constant 1 : index
    %c0_3 = arith.constant 0 : index
    %2 = vector.load %arg3[%c1, %c0_3] : memref<2x32xf32, #tpu.memory_space<vmem>>, vector<1x32xf32>
    %3 = vector.broadcast %1 : vector<1x32xf32> to vector<8x32xf32>
    %4 = arith.mulf %0, %3 : vector<8x32xf32>
    %5 = vector.broadcast %2 : vector<1x32xf32> to vector<8x32xf32>
    %6 = arith.addf %4, %5 : vector<8x32xf32>
    %cst = arith.constant 1.000000e-01 : f32
    %7 = vector.broadcast %cst : f32 to vector<8x32xf32>
    %8 = arith.mulf %7, %6 : vector<8x32xf32>
    %9 = arith.maximumf %6, %8 : vector<8x32xf32>
    %c0_4 = arith.constant 0 : index
    %c0_5 = arith.constant 0 : index
    %10 = vector.load %arg5[%c0_4, %c0_5] : memref<32x64xf32, #tpu.memory_space<vmem>>, vector<32x64xf32>
    %cst_6 = arith.constant dense<0.000000e+00> : vector<8x64xf32>
    %11 = tpu.matmul %9, %10, %cst_6 {dimension_numbers = #tpu.dot_dimension_numbers<[1], [0], [0], [1], [0, 0, 1, 1], [], []>} : vector<8x32xf32>, vector<32x64xf32>, vector<8x64xf32> -> vector<8x64xf32>
    %c0_7 = arith.constant 0 : index
    %c0_8 = arith.constant 0 : index
    %12 = vector.load %arg6[%c0_7, %c0_8] : memref<8x64xf32, #tpu.memory_space<vmem>>, vector<8x64xf32>
    tpu.vector_store %arg6[%c0_7, %c0_8], %11 {strides = array<i32>} : memref<8x64xf32, #tpu.memory_space<vmem>>, vector<8x64xf32>,
    return
  }
  func.func @transform_0(%arg0: i32, %arg1: i32, %arg2: i32) -> (i32, i32) {
    %c0_i32 = arith.constant 0 : i32
    %c0_i32_0 = arith.constant 0 : i32
    %c0_i32_1 = arith.constant 0 : i32
    return %c0_i32, %c0_i32_0 : i32, i32
  }
  func.func @transform_1(%arg0: i32, %arg1: i32, %arg2: i32) -> (i32, i32) {
    %c0_i32 = arith.constant 0 : i32
    return %arg0, %arg2 : i32, i32
  }
  func.func @transform_2(%arg0: i32, %arg1: i32, %arg2: i32) -> (i32, i32) {
    %c0_i32 = arith.constant 0 : i32
    return %arg2, %arg1 : i32, i32
  }
  func.func @transform_3(%arg0: i32, %arg1: i32, %arg2: i32) -> (i32, i32) {
    %c0_i32 = arith.constant 0 : i32
    return %arg0, %arg1 : i32, i32
  }
}

</mosaic_0001>

<bundles_post_ra>
// kernel: tpu_custom_call.1
= control target key start
LH: loop header
LB: loop body
LE: loop exit
PB: predicated region body
PF: predicated region fallthrough
CT: control target
= control target key end

     0   :  { %8 = vsyncpa [#allocation3], 0  ;;  %s368_s0 = inlined_call_operand.hbm [shape: f32[2,32], index: 0, kind: input, shape index: {}]   ;;  %s369_s1 = inlined_call_operand.hbm [shape: f32[8,32], index: 1, kind: input, shape index: {}]   ;;  %s370_s2 = inlined_call_operand.hbm [shape: f32[32,64], index: 2, kind: input, shape index: {}]   ;;  %s371_s3 = inlined_call_operand.hbm [shape: f32[8,64], index: 3, kind: output, shape index: {}]  }
   0x1   :  { %9 = vsyncpa [#allocation6], 0 }
   0x2   :  { %10 = vsyncpa [#allocation4], 0  ;;  %s291_s12 = smov [#allocation5]   ;;  %s292_s14 = smov [#allocation2]  }
   0x3   :  { %s27_s13 = sshll.u32 %s291_s12, 4  ;;  %s17_s15 = sshll.u32 %s292_s14, 4  ;;  %s28_s13 = int_to_ptr.vmem [resolvable:$true] %s27_s13  ;;  %s18_s15 = int_to_ptr.vmem [resolvable:$true] %s17_s15 }
   0x4   :  { %s197_s18 = scalar_lea.hbm %s369_s1, 128 }
   0x5   :  { %p198_p0 = scmp.ne.s32.totalorder %s369_s1, %s197_s18  ;;  %p201_p1 = scmp.lt.u32.totalorder %s197_s18, %s369_s1 }
   0x7   :  { %p203_p2 = pnand %p201_p1, %p198_p0 }
   0x9   :  { %206 = shalt.err (!%p203_p2)
}
   0xa   :  { %s207_s23 = scalar_lea.vmem %s28_s13, 128  ;;  %p212_p4 = scmp.lt.s32.totalorder %s28_s13, %s28_s13 }
   0xb   :  { %p208_p3 = scmp.ne.s32.totalorder %s28_s13, %s207_s23  ;;  %p213_p5 = scmp.lt.s32.totalorder %s207_s23, %s207_s23 }
   0xd   :  { %p214_p6 = por %p213_p5, %p212_p4 }
   0xf   :  { %p215_p7 = pnand %p214_p6, %p208_p3 }
  0x11   :  { %218 = shalt.err (!%p215_p7)
}
  0x12   :  { %30 = dma.hbm_to_vmem [thread:$0]  %s369_s1, 128, %s28_s13, [#allocation6]  }
  0x13   :  { %s219_s28 = scalar_lea.hbm %s368_s0, 32 }
  0x14   :  { %p220_p8 = scmp.ne.s32.totalorder %s368_s0, %s219_s28  ;;  %p223_p9 = scmp.lt.u32.totalorder %s219_s28, %s368_s0 }
  0x16   :  { %p225_p10 = pnand %p223_p9, %p220_p8 }
  0x18   :  { %228 = shalt.err (!%p225_p10)
}
  0x19   :  { %s229_s6 = scalar_lea.vmem %s18_s15, 32  ;;  %p234_p12 = scmp.lt.s32.totalorder %s18_s15, %s18_s15 }
  0x1a   :  { %p230_p11 = scmp.ne.s32.totalorder %s18_s15, %s229_s6  ;;  %p235_p13 = scmp.lt.s32.totalorder %s229_s6, %s229_s6 }
  0x1c   :  { %p236_p0 = por %p235_p13, %p234_p12 }
  0x1e   :  { %p237_p1 = pnand %p236_p0, %p230_p11 }
  0x20   :  { %240 = shalt.err (!%p237_p1)
}
  0x21   :  { %20 = dma.hbm_to_vmem [thread:$0]  %s368_s0, 32, %s18_s15, [#allocation3]  }
  0x22   :  { %s293_s8 = smov [#allocation7]   ;;  %s241_s12 = scalar_lea.hbm %s370_s2, 512 }
  0x23   :  { %s36_s9 = sshll.u32 %s293_s8, 4  ;;  %p242_p2 = scmp.ne.s32.totalorder %s370_s2, %s241_s12  ;;  %s37_s9 = int_to_ptr.vmem [resolvable:$true] %s36_s9 }
  0x24   :  { %p245_p3 = scmp.lt.u32.totalorder %s241_s12, %s370_s2 }
  0x26   :  { %p247_p4 = pnand %p245_p3, %p242_p2 }
  0x28   :  { %250 = shalt.err (!%p247_p4)
}
  0x29   :  { %s251_s18 = scalar_lea.vmem %s37_s9, 512  ;;  %p256_p6 = scmp.lt.s32.totalorder %s37_s9, %s37_s9 }
  0x2a   :  { %p252_p5 = scmp.ne.s32.totalorder %s37_s9, %s251_s18  ;;  %p257_p7 = scmp.lt.s32.totalorder %s251_s18, %s251_s18 }
  0x2c   :  { %p258_p8 = por %p257_p7, %p256_p6 }
  0x2e   :  { %p259_p9 = pnand %p258_p8, %p252_p5 }
  0x30   :  { %262 = shalt.err (!%p259_p9)
}
  0x31   :  { %s294_s0 = smov 128   ;;  %s295_s15 = smov 8  }
  0x32   :  { %42 = dma.hbm_to_vmem [thread:$0]  %s370_s2, 512, %s37_s9, [#allocation6], %s294_s0, %s294_s0, %s295_s15  }
  0x33   :  { %285 = dma.done.wait [#allocation3], 32  }
  0x34   :  { %286 = vsyncadd [#allocation3], 4294967264 }
  0x35   :  { %287 = dma.done.wait [#allocation6], 640  }
  0x36   :  { %288 = vsyncadd [#allocation6], 4294966656  ;;  %v296_v0 = vmov 0.0|0.0   ;;  %vm297_vm0 = vmmov 0   ;;  %v298_v1 = vmov 0.0   ;;  %v67_v2 = vld [vmem:[#allocation7] sm:$0xff] }
  0x37   :  { %182 = vmatprep.subr.bf16.mxu0 %v296_v0  ;;  %179 = vmatprep.mubr.msk.f32.mxu0 %vm297_vm0, %v298_v1  ;;  %v68_v3 = vld [vmem:[#allocation7 + $0x8] sm:$0xff]  ;;  %v69_v4 = vld [vmem:[#allocation7 + $0x10] sm:$0xff]  ;;  %v70_v6 = vld [vmem:[#allocation7 + $0x18] sm:$0xff]  ;;  %vm71_vm1 = vcmask 261120   ;;  %s299_s2 = smov [#allocation8]   ;;  %vm145_vm2 = vcmask 523264  }
  0x38   :  { %v183_v5 = vpack.c.bf16 %v68_v3, %v67_v2  ;;  %v52_v7 = vld [vmem:[#allocation5] sm:$0xff]  ;;  %v163_v8 = vld [vmem:[#allocation2] ss:$0 sm:$0xff]  ;;  %v164_v9 = vld [vmem:[#allocation2 + $0x1] ss:$0 sm:$0xff]  ;;  %v186_v11 = vpack.c.bf16 %v70_v6, %v69_v4  ;;  %s153_s21 = sshll.u32 %s299_s2, 4  ;;  %s154_s21 = int_to_ptr.vmem [resolvable:$true] %s153_s21 }
  0x39   :  { %v59_v10 = vmul.f32 %v163_v8, %v52_v7  ;;  %s263_s22 = scalar_lea.vmem %s154_s21, 128  ;;  %p268_p11 = scmp.lt.s32.totalorder %s154_s21, %s154_s21 }
  0x3a   :  { %184 = vmatpush3.bf16.msra.mxu0 %v183_v5  ;;  %p264_p10 = scmp.ne.s32.totalorder %s154_s21, %s263_s22  ;;  %p269_p12 = scmp.lt.s32.totalorder %s263_s22, %s263_s22 }
  0x3b   :  { %185 = vmatprep.subr.bf16.mxu0 %v296_v0  ;;  %v64_v12 = vadd.f32 %v164_v9, %v59_v10 }
  0x3c   :  { %p270_p13 = por %p269_p12, %p268_p11 }
  0x3d   :  { %v65_v13 = vmul.f32 0.1, %v64_v12 }
  0x3e   :  { %187 = vmatpush3.bf16.msra.mxu0 %v186_v11  ;;  %p271_p0 = pnand %p270_p13, %p264_p10 }
  0x3f   :  { %v66_v14 = vmax.f32 %v64_v12, %v65_v13 }
  0x41   :  { %180 = vmatmul.mubr.msk.f32.vlgmr.msra.gmra.mrb[0].mxu0 %vm71_vm1, %v66_v14 }
 0x114   :  { %v141_v15 = vpop.f32.mrb[0].mxu0 }
 0x115   :  { %v181_v16 = vpop.f32.mrb[1].mxu0  ;;  %146 = vst.msk [vmem:[#allocation8] sm:$0xff] %vm145_vm2, %v141_v15 }
 0x116   :  { %274 = shalt.err (!%p271_p0)
}
 0x117   :  { %s275_s25 = scalar_lea.hbm %s371_s3, 128 }
 0x118   :  { %p276_p1 = scmp.ne.s32.totalorder %s371_s3, %s275_s25  ;;  %p279_p2 = scmp.lt.u32.totalorder %s275_s25, %s371_s3 }
 0x11a   :  { %p281_p3 = pnand %p279_p2, %p276_p1 }
 0x11c   :  { %284 = shalt.err (!%p281_p3)
}
 0x11d   :  { %156 = dma.vmem_to_hbm [thread:$0]  %s154_s21, 128, %s371_s3, [#allocation4]  }
 0x11e   :  { %289 = dma.done.wait [#allocation4], 128  }
 0x11f   :  { %290 = vsyncadd [#allocation4], 4294967168 }
 0x120   :  { %160 = vsyncpa [#allocation3], 1 }
 0x121   :  { %161 = vsyncpa [#allocation6], 1 }
 0x122   :  { %162 = vsyncpa [#allocation4], 1 }

</bundles_post_ra>
